<compile_context>
chip_gen: v6e
topology: v6e:2x2x1
jax: 0.10.0
libtpu: 0.0.40
codegen_flags: <defaults>
</compile_context>

<pallas_src>
import functools

import jax
import jax.numpy as jnp
from jax.experimental import pallas as pl
from jax.experimental.pallas import tpu as pltpu


def _round_up(x, m):
    return (x + m - 1) // m * m


def _qformer_output_kernel(hs_ref, res_ref, w_ref, p_ref, o_ref, *,
                           eps, n_valid, chunk_rows, lhs_dtype):
    # Grid-invariant operands, hoisted out of the chunk loop.
    w = w_ref[...]                       # (K, Np), compute dtype
    bias = p_ref[0:1, :]                 # (1, Np) f32
    gamma = p_ref[1:2, :]                # (1, Np) f32
    beta = p_ref[2:3, :]                 # (1, Np) f32

    tm = hs_ref.shape[0]
    n_padded = o_ref.shape[-1]
    num_chunks = tm // chunk_rows        # tm is guaranteed a multiple

    def process_chunk(r0):
        # Cast the LHS chunk in-kernel (no standalone XLA cast pass over HBM).
        lhs = hs_ref[pl.ds(r0, chunk_rows), :].astype(lhs_dtype)
        # Dense: (chunk, K) @ (K, Np), f32 accumulation on the MXU.
        x = jnp.dot(lhs, w, preferred_element_type=jnp.float32)
        x = x + bias

        # TODO(synk): Dropout is identity in eval mode; training-mode
        # stochastic masking (pltpu.prng_*) intentionally not implemented.

        # Residual add in f32 (residual kept at its original precision).
        x = x + res_ref[pl.ds(r0, chunk_rows), :].astype(jnp.float32)

        if n_valid == n_padded:
            # Lane-dense hidden dim (real config, e.g. 768).
            mean = jnp.mean(x, axis=-1, keepdims=True)
            centered = x - mean
            var = jnp.mean(centered * centered, axis=-1, keepdims=True)
        else:
            # Hidden dim padded to a multiple of 128 for lane-dense stores:
            # LayerNorm statistics over the first n_valid lanes only.
            lane = jax.lax.broadcasted_iota(jnp.int32, (1, n_padded), 1)
            mask = (lane < n_valid).astype(jnp.float32)
            inv_n = 1.0 / float(n_valid)
            mean = jnp.sum(x * mask, axis=-1, keepdims=True) * inv_n
            centered = x - mean
            var = jnp.sum(centered * centered * mask, axis=-1,
                          keepdims=True) * inv_n

        inv = jax.lax.rsqrt(var + eps)
        y = centered * inv * gamma + beta
        o_ref[pl.ds(r0, chunk_rows), :] = y.astype(o_ref.dtype)

    # Unrolled chunk loop: the LLO scheduler can overlap chunk j's LN
    # epilogue with chunk j+1's MXU matmul.
    for c in range(num_chunks):
        process_chunk(c * chunk_rows)


def _vmem_limit_bytes():
    """Scoped-VMEM limit derived from the device (conservative fallback)."""
    try:
        cap = pltpu.get_tpu_info().vmem_capacity_bytes
    except Exception:
        cap = 64 * 1024 * 1024  # v7x per-TC VMEM: safe everywhere
    return int(min(cap * 3 // 4, 96 * 1024 * 1024))


def _choose_tile_m(K, Np, in_bytes, res_bytes, out_bytes, compute_bytes,
                   budget, tm_max, chunk_rows):
    """Largest TM whose footprint fits `budget` (single-buffered residents)."""
    # Resident, single-buffered: weight + packed LN params + per-chunk LHS
    # cast buffer.
    resident = (K * Np * compute_bytes + 3 * Np * 4
                + chunk_rows * K * compute_bytes)
    # Per-row: double-buffered activation / residual / output DMA tiles plus
    # ~4 f32 (TM, Np) temporaries (dot result, centered, y, Mosaic scratch).
    per_row = (2 * (K * in_bytes + Np * res_bytes + Np * out_bytes)
               + 4 * Np * 4)
    avail = max(budget - resident, per_row * 8)
    tm = max(avail // per_row, 8)
    tm = min(tm, tm_max)
    return int(tm)


def instructblip_qformer_output(hidden_states, input_tensor, params,
                                eps=1e-12, compute_dtype=jnp.bfloat16,
                                out_dtype=None, tm_max=4096, chunk_rows=256):
    """hidden_states: [B, S, intermediate], input_tensor: [B, S, hidden]."""
    B, S, K = hidden_states.shape
    N = input_tensor.shape[-1]
    M = B * S
    if out_dtype is None:
        out_dtype = hidden_states.dtype

    # Pad the hidden dim to a multiple of 128 so the output is lane-dense
    # (full-width vector stores). No-op for the real hidden=768.
    Np = _round_up(N, 128)

    # NOTE: no dtype cast here — the kernel reads the activation / residual
    # in their original dtypes (avoids an extra full HBM read+write pass).
    hs2d = hidden_states.reshape(M, K)
    res2d = input_tensor.reshape(M, N)
    w = params["dense_w"]                                 # [K, N]
    b = params["dense_b"].reshape(1, N).astype(jnp.float32)
    gamma = params["ln_g"].reshape(1, N).astype(jnp.float32)
    beta = params["ln_b"].reshape(1, N).astype(jnp.float32)

    if Np != N:
        pad = Np - N
        res2d = jnp.pad(res2d, ((0, 0), (0, pad)))
        w = jnp.pad(w, ((0, 0), (0, pad)))
        b = jnp.pad(b, ((0, 0), (0, pad)))
        gamma = jnp.pad(gamma, ((0, 0), (0, pad)))
        beta = jnp.pad(beta, ((0, 0), (0, pad)))

    # Weight is small (K x N): a one-time wrapper-side cast is negligible.
    w = w.astype(compute_dtype)
    # Pack bias / gamma / beta into a single (3, Np) f32 resident input.
    packed = jnp.concatenate([b, gamma, beta], axis=0)

    in_bytes = jnp.dtype(hs2d.dtype).itemsize
    res_bytes = jnp.dtype(res2d.dtype).itemsize
    out_bytes = jnp.dtype(out_dtype).itemsize
    compute_bytes = jnp.dtype(compute_dtype).itemsize
    vmem_limit = _vmem_limit_bytes()

    # Requested in-kernel chunk granularity (multiple of 8 sublanes).
    chunk_rows = max((int(chunk_rows) // 8) * 8, 8)

    tm = _choose_tile_m(K, Np, in_bytes, res_bytes, out_bytes, compute_bytes,
                        int(vmem_limit * 0.85), tm_max, chunk_rows)
    # Megacore: ensure >= 2 grid steps so the "parallel" M axis can shard
    # across v7x's two TensorCores (harmless on 1-TC parts).
    tm = min(tm, _round_up(pl.cdiv(M, 2), 8))
    tm = min(tm, _round_up(M, 8))
    tm = max((tm // 8) * 8, 8)
    # Align tm to the in-kernel chunk size.
    if tm > chunk_rows:
        tm = (tm // chunk_rows) * chunk_rows
    else:
        chunk_rows = tm
    grid_m = pl.cdiv(M, tm)

    kernel = functools.partial(_qformer_output_kernel, eps=eps, n_valid=N,
                               chunk_rows=chunk_rows, lhs_dtype=compute_dtype)

    def _in_specs(single_buffer_invariants):
        inv_kwargs = {}
        if single_buffer_invariants:
            inv_kwargs = dict(pipeline_mode=pl.Buffered(1))
        return [
            pl.BlockSpec((tm, K), lambda i: (i, 0)),            # activations
            pl.BlockSpec((tm, Np), lambda i: (i, 0)),           # residual
            pl.BlockSpec((K, Np), lambda i: (0, 0), **inv_kwargs),  # weight
            pl.BlockSpec((3, Np), lambda i: (0, 0), **inv_kwargs),  # b/g/beta
        ]

    def _run(single_buffer_invariants):
        out = pl.pallas_call(
            kernel,
            out_shape=jax.ShapeDtypeStruct((M, Np), out_dtype),
            grid_spec=pltpu.PrefetchScalarGridSpec(
                num_scalar_prefetch=0,
                grid=(grid_m,),
                in_specs=_in_specs(single_buffer_invariants),
                out_specs=pl.BlockSpec((tm, Np), lambda i: (i, 0)),
            ),
            compiler_params=pltpu.CompilerParams(
                dimension_semantics=("parallel",),
                vmem_limit_bytes=vmem_limit),
        )(hs2d, res2d, w, packed)
        return jax.block_until_ready(out)

    try:
        out = _run(True)
    except Exception:
        # TODO(synk): pl.Buffered(1) unsupported on this build — fall back to
        # default double buffering for the grid-invariant operands.
        out = _run(False)

    if Np != N:
        out = out[:, :N]
    return out.reshape(B, S, N)


def _reference(hidden_states, input_tensor, params, eps=1e-12):
    x = hidden_states @ params["dense_w"] + params["dense_b"]
    x = x + input_tensor
    mean = jnp.mean(x, axis=-1, keepdims=True)
    var = jnp.mean((x - mean) ** 2, axis=-1, keepdims=True)
    y = (x - mean) * jax.lax.rsqrt(var + eps)
    return y * params["ln_g"] + params["ln_b"]


if __name__ == "__main__":
    # config: intermediate_size=128, hidden_size=32, layer_norm_eps=1e-12
    B, S = 2, 8
    INTERMEDIATE, HIDDEN = 128, 32
    EPS = 1e-12

    key = jax.random.PRNGKey(0)
    k1, k2, k3, k4, k5 = jax.random.split(key, 5)

    hidden_states = jax.random.normal(k1, (B, S, INTERMEDIATE), jnp.float32)
    input_tensor = jax.random.normal(k2, (B, S, HIDDEN), jnp.float32)

    params = {
        # nn.Linear(intermediate, hidden): torch weight is [H, I]; stored
        # pre-transposed as [I, H] for the (M,K)x(K,N) matmul.
        "dense_w": 0.02 * jax.random.normal(k3, (INTERMEDIATE, HIDDEN),
                                            jnp.float32),
        "dense_b": 0.01 * jax.random.normal(k4, (HIDDEN,), jnp.float32),
        "ln_g": jnp.ones((HIDDEN,), jnp.float32),
        "ln_b": jnp.zeros((HIDDEN,), jnp.float32),
    }

    ref = _reference(hidden_states, input_tensor, params, eps=EPS)

    # 1) f32 compute path — exact check against the reference.
    out_f32 = instructblip_qformer_output(hidden_states, input_tensor, params,
                                          eps=EPS, compute_dtype=jnp.float32)
    out_f32 = jax.block_until_ready(out_f32)
    assert out_f32.shape == (B, S, HIDDEN)
    assert jnp.allclose(out_f32, ref, atol=1e-4, rtol=1e-4), "f32 mismatch"

    # 2) bf16 compute path (default): f32 activations cast to bf16 in-kernel,
    #    bf16 weight, f32 residual/LN math, bf16 output writeback.
    out_bf16 = instructblip_qformer_output(hidden_states, input_tensor, params,
                                           eps=EPS,
                                           compute_dtype=jnp.bfloat16,
                                           out_dtype=jnp.bfloat16)
    out_bf16 = jax.block_until_ready(out_bf16)
    assert jnp.allclose(out_bf16.astype(jnp.float32), ref,
                        atol=5e-2, rtol=5e-2), "bf16 mismatch"

    # 3) Multi-tile grid path with a partial last block and multiple
    #    in-kernel sub-chunks per tile (exercises the unrolled chunk loop).
    S2 = 37
    hs2 = jax.random.normal(k5, (B, S2, INTERMEDIATE), jnp.float32)
    res2 = jax.random.normal(k2, (B, S2, HIDDEN), jnp.float32)
    ref2 = _reference(hs2, res2, params, eps=EPS)
    out2 = instructblip_qformer_output(hs2, res2, params, eps=EPS,
                                       compute_dtype=jnp.float32,
                                       tm_max=32, chunk_rows=8)
    out2 = jax.block_until_ready(out2)
    assert jnp.allclose(out2, ref2, atol=1e-4, rtol=1e-4), "tiled mismatch"

    print("KERNEL_OK")
</pallas_src>

<mosaic_0001>
module attributes {stable_mosaic.version = 11 : i64} {
  func.func @_qformer_output_kernel(%arg0: i32, %arg1: memref<8x128xf32, #tpu.memory_space<vmem>>, %arg2: memref<8x128xf32, #tpu.memory_space<vmem>>, %arg3: memref<128x128xf32, #tpu.memory_space<vmem>>, %arg4: memref<3x128xf32, #tpu.memory_space<vmem>>, %arg5: memref<8x128xf32, #tpu.memory_space<vmem>>) attributes {dimension_semantics = [#tpu.dimension_semantics<parallel>], iteration_bounds = array<i64: 2>, scalar_prefetch = 0 : i64, scratch_operands = 0 : i64, tpu.core_type = #tpu.core_type<tc>, window_params = [{transform_indices = @transform_0, window_bounds = array<i64: 8, 128>}, {transform_indices = @transform_1, window_bounds = array<i64: 8, 128>}, {pipeline_mode = #tpu.pipeline_mode<synchronous>, transform_indices = @transform_2, window_bounds = array<i64: 128, 128>}, {pipeline_mode = #tpu.pipeline_mode<synchronous>, transform_indices = @transform_3, window_bounds = array<i64: 3, 128>}, {transform_indices = @transform_4, window_bounds = array<i64: 8, 128>}]} {
    %c0 = arith.constant 0 : index
    %c0_0 = arith.constant 0 : index
    %0 = vector.load %arg3[%c0, %c0_0] : memref<128x128xf32, #tpu.memory_space<vmem>>, vector<128x128xf32>
    %c0_1 = arith.constant 0 : index
    %c0_2 = arith.constant 0 : index
    %1 = vector.load %arg4[%c0_1, %c0_2] : memref<3x128xf32, #tpu.memory_space<vmem>>, vector<1x128xf32>
    %c1 = arith.constant 1 : index
    %c0_3 = arith.constant 0 : index
    %2 = vector.load %arg4[%c1, %c0_3] : memref<3x128xf32, #tpu.memory_space<vmem>>, vector<1x128xf32>
    %c2 = arith.constant 2 : index
    %c0_4 = arith.constant 0 : index
    %3 = vector.load %arg4[%c2, %c0_4] : memref<3x128xf32, #tpu.memory_space<vmem>>, vector<1x128xf32>
    %c0_5 = arith.constant 0 : index
    %c0_6 = arith.constant 0 : index
    %4 = vector.load %arg1[%c0_5, %c0_6] : memref<8x128xf32, #tpu.memory_space<vmem>>, vector<8x128xf32>
    %cst = arith.constant dense<0.000000e+00> : vector<8x128xf32>
    %5 = tpu.matmul %4, %0, %cst {dimension_numbers = #tpu.dot_dimension_numbers<[1], [0], [0], [1], [0, 0, 1, 1], [], []>} : vector<8x128xf32>, vector<128x128xf32>, vector<8x128xf32> -> vector<8x128xf32>
    %6 = vector.broadcast %1 : vector<1x128xf32> to vector<8x128xf32>
    %7 = arith.addf %5, %6 : vector<8x128xf32>
    %c0_7 = arith.constant 0 : index
    %c0_8 = arith.constant 0 : index
    %8 = vector.load %arg2[%c0_7, %c0_8] : memref<8x128xf32, #tpu.memory_space<vmem>>, vector<8x128xf32>
    %9 = arith.addf %7, %8 : vector<8x128xf32>
    %10 = tpu.iota {dimensions = array<i32: 1>} : vector<1x128xi32>
    %c32_i32 = arith.constant 32 : i32
    %11 = vector.broadcast %c32_i32 : i32 to vector<1x128xi32>
    %12 = arith.cmpi slt, %10, %11 : vector<1x128xi32>
    %13 = arith.extui %12 : vector<1x128xi1> to vector<1x128xi32>
    %14 = arith.sitofp %13 : vector<1x128xi32> to vector<1x128xf32>
    %15 = vector.broadcast %14 : vector<1x128xf32> to vector<8x128xf32>
    %16 = arith.mulf %9, %15 : vector<8x128xf32>
    %cst_9 = arith.constant dense<0.000000e+00> : vector<8xf32>
    %17 = vector.multi_reduction <add>, %16, %cst_9 [1] : vector<8x128xf32> to vector<8xf32>
    %18 = vector.shape_cast %17 : vector<8xf32> to vector<8x1xf32>
    %cst_10 = arith.constant 3.125000e-02 : f32
    %19 = vector.broadcast %cst_10 : f32 to vector<8x1xf32>
    %20 = arith.mulf %18, %19 : vector<8x1xf32>
    %21 = vector.broadcast %20 : vector<8x1xf32> to vector<8x128xf32>
    %22 = arith.subf %9, %21 : vector<8x128xf32>
    %23 = arith.mulf %22, %22 : vector<8x128xf32>
    %24 = vector.broadcast %14 : vector<1x128xf32> to vector<8x128xf32>
    %25 = arith.mulf %23, %24 : vector<8x128xf32>
    %cst_11 = arith.constant dense<0.000000e+00> : vector<8xf32>
    %26 = vector.multi_reduction <add>, %25, %cst_11 [1] : vector<8x128xf32> to vector<8xf32>
    %27 = vector.shape_cast %26 : vector<8xf32> to vector<8x1xf32>
    %cst_12 = arith.constant 3.125000e-02 : f32
    %28 = vector.broadcast %cst_12 : f32 to vector<8x1xf32>
    %29 = arith.mulf %27, %28 : vector<8x1xf32>
    %cst_13 = arith.constant 9.99999996E-13 : f32
    %30 = vector.broadcast %cst_13 : f32 to vector<8x1xf32>
    %31 = arith.addf %29, %30 : vector<8x1xf32>
    %32 = math.rsqrt %31 : vector<8x1xf32>
    %33 = vector.broadcast %32 : vector<8x1xf32> to vector<8x128xf32>
    %34 = arith.mulf %22, %33 : vector<8x128xf32>
    %35 = vector.broadcast %2 : vector<1x128xf32> to vector<8x128xf32>
    %36 = arith.mulf %34, %35 : vector<8x128xf32>
    %37 = vector.broadcast %3 : vector<1x128xf32> to vector<8x128xf32>
    %38 = arith.addf %36, %37 : vector<8x128xf32>
    %c0_14 = arith.constant 0 : index
    %c0_15 = arith.constant 0 : index
    %39 = vector.load %arg5[%c0_14, %c0_15] : memref<8x128xf32, #tpu.memory_space<vmem>>, vector<8x128xf32>
    tpu.vector_store %arg5[%c0_14, %c0_15], %38 {strides = array<i32>} : memref<8x128xf32, #tpu.memory_space<vmem>>, vector<8x128xf32>,
    return
  }
  func.func @transform_0(%arg0: i32) -> (i32, i32) {
    %c0_i32 = arith.constant 0 : i32
    %c0_i32_0 = arith.constant 0 : i32
    return %arg0, %c0_i32 : i32, i32
  }
  func.func @transform_1(%arg0: i32) -> (i32, i32) {
    %c0_i32 = arith.constant 0 : i32
    %c0_i32_0 = arith.constant 0 : i32
    return %arg0, %c0_i32 : i32, i32
  }
  func.func @transform_2(%arg0: i32) -> (i32, i32) {
    %c0_i32 = arith.constant 0 : i32
    %c0_i32_0 = arith.constant 0 : i32
    %c0_i32_1 = arith.constant 0 : i32
    return %c0_i32, %c0_i32_0 : i32, i32
  }
  func.func @transform_3(%arg0: i32) -> (i32, i32) {
    %c0_i32 = arith.constant 0 : i32
    %c0_i32_0 = arith.constant 0 : i32
    %c0_i32_1 = arith.constant 0 : i32
    return %c0_i32, %c0_i32_0 : i32, i32
  }
  func.func @transform_4(%arg0: i32) -> (i32, i32) {
    %c0_i32 = arith.constant 0 : i32
    %c0_i32_0 = arith.constant 0 : i32
    return %arg0, %c0_i32 : i32, i32
  }
}

module attributes {stable_mosaic.version = 11 : i64} {
  func.func @_qformer_output_kernel(%arg0: i32, %arg1: memref<8x128xf32, #tpu.memory_space<vmem>>, %arg2: memref<8x128xf32, #tpu.memory_space<vmem>>, %arg3: memref<128x128xf32, #tpu.memory_space<vmem>>, %arg4: memref<3x128xf32, #tpu.memory_space<vmem>>, %arg5: memref<8x128xf32, #tpu.memory_space<vmem>>) attributes {dimension_semantics = [#tpu.dimension_semantics<parallel>], iteration_bounds = array<i64: 2>, scalar_prefetch = 0 : i64, scratch_operands = 0 : i64, tpu.core_type = #tpu.core_type<tc>, window_params = [{transform_indices = @transform_0, window_bounds = array<i64: 8, 128>}, {transform_indices = @transform_1, window_bounds = array<i64: 8, 128>}, {pipeline_mode = #tpu.pipeline_mode<synchronous>, transform_indices = @transform_2, window_bounds = array<i64: 128, 128>}, {pipeline_mode = #tpu.pipeline_mode<synchronous>, transform_indices = @transform_3, window_bounds = array<i64: 3, 128>}, {transform_indices = @transform_4, window_bounds = array<i64: 8, 128>}]} {
    %c0 = arith.constant 0 : index
    %c0_0 = arith.constant 0 : index
    %0 = vector.load %arg3[%c0, %c0_0] : memref<128x128xf32, #tpu.memory_space<vmem>>, vector<128x128xf32>
    %c0_1 = arith.constant 0 : index
    %c0_2 = arith.constant 0 : index
    %1 = vector.load %arg4[%c0_1, %c0_2] : memref<3x128xf32, #tpu.memory_space<vmem>>, vector<1x128xf32>
    %c1 = arith.constant 1 : index
    %c0_3 = arith.constant 0 : index
    %2 = vector.load %arg4[%c1, %c0_3] : memref<3x128xf32, #tpu.memory_space<vmem>>, vector<1x128xf32>
    %c2 = arith.constant 2 : index
    %c0_4 = arith.constant 0 : index
    %3 = vector.load %arg4[%c2, %c0_4] : memref<3x128xf32, #tpu.memory_space<vmem>>, vector<1x128xf32>
    %c0_5 = arith.constant 0 : index
    %c0_6 = arith.constant 0 : index
    %4 = vector.load %arg1[%c0_5, %c0_6] : memref<8x128xf32, #tpu.memory_space<vmem>>, vector<8x128xf32>
    %cst = arith.constant dense<0.000000e+00> : vector<8x128xf32>
    %5 = tpu.matmul %4, %0, %cst {dimension_numbers = #tpu.dot_dimension_numbers<[1], [0], [0], [1], [0, 0, 1, 1], [], []>} : vector<8x128xf32>, vector<128x128xf32>, vector<8x128xf32> -> vector<8x128xf32>
    %6 = vector.broadcast %1 : vector<1x128xf32> to vector<8x128xf32>
    %7 = arith.addf %5, %6 : vector<8x128xf32>
    %c0_7 = arith.constant 0 : index
    %c0_8 = arith.constant 0 : index
    %8 = vector.load %arg2[%c0_7, %c0_8] : memref<8x128xf32, #tpu.memory_space<vmem>>, vector<8x128xf32>
    %9 = arith.addf %7, %8 : vector<8x128xf32>
    %10 = tpu.iota {dimensions = array<i32: 1>} : vector<1x128xi32>
    %c32_i32 = arith.constant 32 : i32
    %11 = vector.broadcast %c32_i32 : i32 to vector<1x128xi32>
    %12 = arith.cmpi slt, %10, %11 : vector<1x128xi32>
    %13 = arith.extui %12 : vector<1x128xi1> to vector<1x128xi32>
    %14 = arith.sitofp %13 : vector<1x128xi32> to vector<1x128xf32>
    %15 = vector.broadcast %14 : vector<1x128xf32> to vector<8x128xf32>
    %16 = arith.mulf %9, %15 : vector<8x128xf32>
    %cst_9 = arith.constant dense<0.000000e+00> : vector<8xf32>
    %17 = vector.multi_reduction <add>, %16, %cst_9 [1] : vector<8x128xf32> to vector<8xf32>
    %18 = vector.shape_cast %17 : vector<8xf32> to vector<8x1xf32>
    %cst_10 = arith.constant 3.125000e-02 : f32
    %19 = vector.broadcast %cst_10 : f32 to vector<8x1xf32>
    %20 = arith.mulf %18, %19 : vector<8x1xf32>
    %21 = vector.broadcast %20 : vector<8x1xf32> to vector<8x128xf32>
    %22 = arith.subf %9, %21 : vector<8x128xf32>
    %23 = arith.mulf %22, %22 : vector<8x128xf32>
    %24 = vector.broadcast %14 : vector<1x128xf32> to vector<8x128xf32>
    %25 = arith.mulf %23, %24 : vector<8x128xf32>
    %cst_11 = arith.constant dense<0.000000e+00> : vector<8xf32>
    %26 = vector.multi_reduction <add>, %25, %cst_11 [1] : vector<8x128xf32> to vector<8xf32>
    %27 = vector.shape_cast %26 : vector<8xf32> to vector<8x1xf32>
    %cst_12 = arith.constant 3.125000e-02 : f32
    %28 = vector.broadcast %cst_12 : f32 to vector<8x1xf32>
    %29 = arith.mulf %27, %28 : vector<8x1xf32>
    %cst_13 = arith.constant 9.99999996E-13 : f32
    %30 = vector.broadcast %cst_13 : f32 to vector<8x1xf32>
    %31 = arith.addf %29, %30 : vector<8x1xf32>
    %32 = math.rsqrt %31 : vector<8x1xf32>
    %33 = vector.broadcast %32 : vector<8x1xf32> to vector<8x128xf32>
    %34 = arith.mulf %22, %33 : vector<8x128xf32>
    %35 = vector.broadcast %2 : vector<1x128xf32> to vector<8x128xf32>
    %36 = arith.mulf %34, %35 : vector<8x128xf32>
    %37 = vector.broadcast %3 : vector<1x128xf32> to vector<8x128xf32>
    %38 = arith.addf %36, %37 : vector<8x128xf32>
    %c0_14 = arith.constant 0 : index
    %c0_15 = arith.constant 0 : index
    %39 = vector.load %arg5[%c0_14, %c0_15] : memref<8x128xf32, #tpu.memory_space<vmem>>, vector<8x128xf32>
    tpu.vector_store %arg5[%c0_14, %c0_15], %38 {strides = array<i32>} : memref<8x128xf32, #tpu.memory_space<vmem>>, vector<8x128xf32>,
    return
  }
  func.func @transform_0(%arg0: i32) -> (i32, i32) {
    %c0_i32 = arith.constant 0 : i32
    %c0_i32_0 = arith.constant 0 : i32
    return %arg0, %c0_i32 : i32, i32
  }
  func.func @transform_1(%arg0: i32) -> (i32, i32) {
    %c0_i32 = arith.constant 0 : i32
    %c0_i32_0 = arith.constant 0 : i32
    return %arg0, %c0_i32 : i32, i32
  }
  func.func @transform_2(%arg0: i32) -> (i32, i32) {
    %c0_i32 = arith.constant 0 : i32
    %c0_i32_0 = arith.constant 0 : i32
    %c0_i32_1 = arith.constant 0 : i32
    return %c0_i32, %c0_i32_0 : i32, i32
  }
  func.func @transform_3(%arg0: i32) -> (i32, i32) {
    %c0_i32 = arith.constant 0 : i32
    %c0_i32_0 = arith.constant 0 : i32
    %c0_i32_1 = arith.constant 0 : i32
    return %c0_i32, %c0_i32_0 : i32, i32
  }
  func.func @transform_4(%arg0: i32) -> (i32, i32) {
    %c0_i32 = arith.constant 0 : i32
    %c0_i32_0 = arith.constant 0 : i32
    return %arg0, %c0_i32 : i32, i32
  }
}

</mosaic_0001>

<bundles_post_ra>
// kernel: tpu_custom_call.1
= control target key start
LH: loop header
LB: loop body
LE: loop exit
PB: predicated region body
PF: predicated region fallthrough
CT: control target
= control target key end

     0   :  { %s1046_s0 = inlined_call_operand.hbm [shape: f32[16,128], index: 0, kind: input, shape index: {}]   ;;  %s1047_s1 = inlined_call_operand.hbm [shape: f32[16,128], index: 1, kind: input, shape index: {}]   ;;  %s1048_s2 = inlined_call_operand.hbm [shape: f32[128,128], index: 2, kind: input, shape index: {}]   ;;  %s1049_s3 = inlined_call_operand.vmem [shape: f32[3,128], index: 3, kind: input, shape index: {}]   ;;  %s1050_s4 = inlined_call_operand.hbm [shape: f32[16,128], index: 4, kind: output, shape index: {}]  }
   0x1   :  { %1055 = sst [smem:[#allocation13_spill]] %s1048_s2 }
   0x2   :  { %9 = vsyncpa [#allocation3], 0 }
   0x3   :  { %11 = vsyncpa [#allocation3 + $0x1], 0 }
   0x4   :  { %12 = vsyncpa [#allocation6], 0 }
   0x5   :  { %14 = vsyncpa [#allocation6 + $0x1], 0 }
   0x6   :  { %15 = vsyncpa [#allocation4], 0 }
   0x7   :  { %17 = vsyncpa [#allocation4 + $0x1], 0  ;;  %s835_s15 = smov 0   ;;  %s837_s16 = smov 0  }
   0x8   :  { %s839_s17 = smov 0   ;;  %s841_s18 = smov 0  }
   0x9 LB: > { %s856_s19 = sadd.s32 4294967295, %s800_s18   ;;  %s505_s20 = sadd.s32 4294967294, %s800_s18   ;;  %s800_s18 = sphi %s841_s18, %s1074_s18   ;;  %s796_s17 = sphi %s839_s17, %s1073_s17   ;;  %s792_s16 = sphi %s837_s16, %s1072_s16   ;;  %s788_s15 = sphi %s835_s15, %s1071_s15  }
   0xa   : > { %p43_p0 = scmp.ne.s32.totalorder %s792_s16, %s788_s15  ;;  %p1051_p1 = scmp.eq.s32.totalorder %s856_s19, 0 }
   0xb   : > { %p141_p3 = scmp.eq.s32.totalorder %s505_s20, 1  ;;  %p506_p5 = scmp.ge.s32.totalorder %s800_s18, 1 }
   0xc   : > { %p865_p4 = por %p1051_p1, %p43_p0  ;;  %p148_p7 = scmp.lt.s32.totalorder %s800_s18, 3 }
   0xd   : > { %p870_p6 = por %p141_p3, %p43_p0  ;;  %s802_s24 = smov [#allocation7]  }
   0xe   : > { %s1056_s21 = scalar_select %p865_p4, 1, 0 }
   0xf   : > { %s1057_s22 = scalar_select %p870_p6, 1, 0 }
  0x10   : > { %p875_p8 = pnand %p506_p5, %p148_p7  ;;  %s160_s25 = sshll.u32 %s802_s24, 4  ;;  %s161_s25 = int_to_ptr.vmem [resolvable:$true] %s160_s25 }
  0x11   : > { %s889_s27 = sadd.s32 1, %s800_s18   ;;  %s30_s28 = sadd.s32 1, %s796_s17 }
  0x12   : > { %s1058_s23 = scalar_select %p875_p8, 1, 0 }
  0x13   : > { %p588_p9 = pneg %p875_p8  ;;  %s27_s29 = ssub.s32 %s800_s18, %s889_s27 }
  0x14   : > { %s657_s30 = scalar_lea.vmem %s161_s25, 2048  ;;  %p665_p5 = scmp.lt.s32.totalorder %s161_s25, %s161_s25 }
  0x15   : > { %p884_p11 = pnand %p588_p9, %p1051_p1  ;;  %p658_p13 = scmp.ne.s32.totalorder %s161_s25, %s657_s30 }
  0x16   : > { %p666_p7 = scmp.lt.s32.totalorder %s657_s30, %s657_s30 }
  0x17   : > { %p648_p12 = pneg %p884_p11 }
  0x18   : > { %p667_p10 = por %p666_p7, %p665_p5 }
  0x19   : > { %p660_p0 = pnand %p658_p13, %p648_p12 }
  0x1b   : > { %p661_p3 = pneg %p660_p0 }
  0x1d   : > { %p668_p2 = pnand %p667_p10, %p661_p3 }
  0x1f   : > { %671 = shalt.err (!%p668_p2)
}
  0x20   : > { %s803_s5 = smov 128   ;;  %s804_s6 = smov 8  }
  0x21   : > { %s1060_s2 = sld [smem:[#allocation13_spill]]  ;;  %p28_p9 = scmp.eq.s32.totalorder %s27_s29, 0 }
  0x22   : > { %p37_p12 = scmp.ne.s32.totalorder %s796_s17, %s792_s16  ;;  %p38_p10 = scmp.eq.s32.totalorder %s800_s18, 0 }
  0x23   : > { %p604_p2 = scmp.lt.s32.totalorder %s800_s18, 2  ;;  %p1061_p0 = scmp.eq.s32.totalorder %s856_s19, 1 }
  0x24   : > { %s906_s9 = scalar_select %p28_p9, %s796_s17, %s30_s28  }
  0x25   : > { %p39_p13 = por %p38_p10, %p37_p12  ;;  %p910_p3 = por %p1061_p0, %p37_p12 }
  0x26   : > { %s177_s11 = sand.u32 1, %s796_s17   ;;  %s510_s12 = sshll.u32 %s800_s18, 7 }
  0x27   : > { %591 = dma.hbm_to_vmem [thread:$0]  (!%p884_p11), %s1060_s2, 2048, %s161_s25, [#allocation6], %s803_s5, %s803_s5, %s804_s6  }
  0x28   : > { %s1062_s10 = scalar_select %p910_p3, 1, 0 }
  0x29   : > { %s916_s13 = sshll.u32 %s177_s11, 3  ;;  %s921_s24 = scalar_lea.hbm %s1046_s0, %s510_s12 }
  0x2a   : > { %s181_s25 = scalar_lea.vmem [#allocation2], %s916_s13  ;;  %p924_p11 = pnand %p604_p2, %p39_p13 }
  0x2b   : > { %s188_s26 = sshll.u32 %s181_s25, 4  ;;  %s931_s5 = scalar_lea.hbm %s1047_s1, %s510_s12  ;;  %s189_s26 = int_to_ptr.vmem [resolvable:$true] %s188_s26 }
  0x2c   : > { %s178_s6 = scalar_lea.sflag [#allocation3], %s177_s11  ;;  %s672_s7 = scalar_lea.hbm %s921_s24, 128 }
  0x2d   : > { %p673_p5 = scmp.ne.s32.totalorder %s921_s24, %s672_s7  ;;  %p674_p7 = pneg %p924_p11 }
  0x2e   : > { %s677_s20 = scalar_lea.hbm %s1046_s0, 256  ;;  %p678_p10 = scmp.lt.s32.totalorder %s921_s24, %s1046_s0 }
  0x2f   : > { %p675_p9 = pnand %p674_p7, %p673_p5  ;;  %p679_p2 = scmp.lt.s32.totalorder %s677_s20, %s672_s7 }
  0x31   : > { %p676_p12 = pneg %p675_p9  ;;  %p680_p13 = por %p679_p2, %p678_p10 }
  0x33   : > { %p681_p0 = pnand %p680_p13, %p676_p12 }
  0x35   : > { %684 = shalt.err (!%p681_p0)
}
  0x36   : > { %s685_s11 = scalar_lea.vmem %s189_s26, 128  ;;  %s805_s12 = smov [#allocation2]  }
  0x37   : > { %p686_p1 = scmp.ne.s32.totalorder %s189_s26, %s685_s11  ;;  %s690_s29 = sshll.u32 %s805_s12, 4  ;;  %s691_s29 = int_to_ptr.vmem [resolvable:$false] %s690_s29 }
  0x38   : > { %s692_s30 = scalar_lea.vmem %s691_s29, 256  ;;  %p693_p9 = scmp.lt.s32.totalorder %s189_s26, %s691_s29 }
  0x39   : > { %p688_p6 = pnand %p686_p1, %p674_p7  ;;  %p694_p3 = scmp.lt.s32.totalorder %s692_s30, %s685_s11 }
  0x3b   : > { %p689_p5 = pneg %p688_p6  ;;  %p695_p4 = por %p694_p3, %p693_p9 }
  0x3d   : > { %p696_p8 = pnand %p695_p4, %p689_p5 }
  0x3f   : > { %699 = shalt.err (!%p696_p8)
}
  0x40   : > { %595 = dma.hbm_to_vmem [thread:$0]  (!%p924_p11), %s921_s24, 128, %s189_s26, %s178_s6  }
  0x41   : > { %s195_s2 = sand.u32 1, %s800_s18   ;;  %s199_s7 = scalar_lea.vmem [#allocation5], %s916_s13 }
  0x42   : > { %s206_s8 = sshll.u32 %s199_s7, 4  ;;  %s196_s14 = scalar_lea.sflag [#allocation6], %s195_s2  ;;  %s207_s8 = int_to_ptr.vmem [resolvable:$true] %s206_s8 }
  0x43   : > { %s700_s20 = scalar_lea.hbm %s931_s5, 128  ;;  %s705_s12 = scalar_lea.hbm %s1047_s1, 256 }
  0x44   : > { %p701_p1 = scmp.ne.s32.totalorder %s931_s5, %s700_s20  ;;  %p706_p8 = scmp.lt.s32.totalorder %s931_s5, %s1047_s1 }
  0x45   : > { %p707_p3 = scmp.lt.s32.totalorder %s705_s12, %s700_s20 }
  0x46   : > { %p703_p4 = pnand %p701_p1, %p674_p7 }
  0x47   : > { %p708_p12 = por %p707_p3, %p706_p8 }
  0x48   : > { %p704_p6 = pneg %p703_p4 }
  0x4a   : > { %p709_p10 = pnand %p708_p12, %p704_p6 }
  0x4c   : > { %712 = shalt.err (!%p709_p10)
}
  0x4d   : > { %s713_s13 = scalar_lea.vmem %s207_s8, 128  ;;  %s806_s24 = smov [#allocation5]  }
  0x4e   : > { %p714_p2 = scmp.ne.s32.totalorder %s207_s8, %s713_s13  ;;  %s718_s26 = sshll.u32 %s806_s24, 4  ;;  %s719_s26 = int_to_ptr.vmem [resolvable:$false] %s718_s26 }
  0x4f   : > { %s720_s6 = scalar_lea.vmem %s719_s26, 256  ;;  %p721_p5 = scmp.lt.s32.totalorder %s207_s8, %s719_s26 }
  0x50   : > { %p716_p13 = pnand %p714_p2, %p674_p7  ;;  %p722_p9 = scmp.lt.s32.totalorder %s720_s6, %s713_s13 }
  0x52   : > { %p717_p0 = pneg %p716_p13  ;;  %p723_p1 = por %p722_p9, %p721_p5 }
  0x54   : > { %p724_p4 = pnand %p723_p1, %p717_p0 }
  0x56   : > { %727 = shalt.err (!%p724_p4)
}
  0x57   : > { %598 = dma.hbm_to_vmem [thread:$0]  (!%p924_p11), %s931_s5, 128, %s207_s8, %s196_s14  }
  0x58   : > { %p1064_p6 = scmp.ne.s32.totalorder %s1058_s23, 0 }
  0x59   : > { %s976_s2 = sand.u32 (!%p1064_p6), 1, %s792_s16   ;;  %p1065_p7 = scmp.ne.s32.totalorder (!%p1064_p6), %s1056_s21, 0 }
  0x5a   : > { %215 = sbr.rel (%p1064_p6) target bundleno = 655 (0x28f), region = 36  ;;  %s979_s7 = sshll.u32 (!%p1064_p6), %s976_s2, 3 }
  0x5b   : > { %s218_s20 = scalar_lea.sflag (!%p1064_p6), [#allocation3], %s976_s2  ;;  %s221_s25 = scalar_lea.vmem (!%p1064_p6), [#allocation2], %s979_s7 }
  0x5f   : > { %771 = dma.done.wait (%p1065_p7), %s218_s20, 128  }
  0x60   : > { %773 = vsyncadd (%p1065_p7), %s218_s20, 4294967168  ;;  %s226_s23 = sand.u32 1, %s856_s19   ;;  %s230_s5 = scalar_lea.vmem [#allocation5], %s979_s7 }
  0x61   : > { %s227_s28 = scalar_lea.sflag [#allocation6], %s226_s23 }
  0x62   : > { %775 = dma.done.wait (%p1065_p7), %s227_s28, 128  }
  0x63   : > { %777 = vsyncadd (%p1065_p7), %s227_s28, 4294967168  ;;  %p1066_p11 = scmp.eq.s32.totalorder %s856_s19, 0 }
  0x65   : > { %779 = dma.done.wait (%p1066_p11), [#allocation6], 2048   ;;  %p1067_p8 = pmov %p1066_p11 }
  0x66   : > { %v807_v0 = vmov 0.0   ;;  %vm808_vm0 = vmmov 0   ;;  %v279_v1 = vld [vmem:[#allocation7 + $0x78] sm:$0xff]  ;;  %v278_v2 = vld [vmem:[#allocation7 + $0x70] sm:$0xff]  ;;  %v277_v3 = vld [vmem:[#allocation7 + $0x68] sm:$0xff]  ;;  %v360_v18 = vlaneseq  ;;  %s523_s30 = sshll.u32 %s856_s19, 7 }
  0x67   : > { %781 = vsyncadd (%p1067_p8), [#allocation6], 4294965248  ;;  %543 = vmatprep.subr.mxu0 %v807_v0  ;;  %575 = vmatprep.mubr.msk.f32.mxu0 %vm808_vm0, %v807_v0  ;;  %v276_v4 = vld [vmem:[#allocation7 + $0x60] sm:$0xff]  ;;  %v275_v5 = vld [vmem:[#allocation7 + $0x58] sm:$0xff]  ;;  %s263_s13 = scalar_lea.vmem [#allocation8], %s979_s7  ;;  %s401_s20 = scalar_lea.hbm %s1050_s4, %s523_s30 }
  0x68   : > { %544 = vmatpush3.msra.mxu0 %v279_v1  ;;  %v274_v6 = vld [vmem:[#allocation7 + $0x50] sm:$0xff]  ;;  %v273_v7 = vld [vmem:[#allocation7 + $0x48] sm:$0xff]  ;;  %v272_v8 = vld [vmem:[#allocation7 + $0x40] sm:$0xff]  ;;  %v361_v19 = vand.u32 127, %v360_v18  ;;  %s403_s24 = sshll.u32 %s263_s13, 4  ;;  %p1068_p12 = scmp.ne.s32.totalorder %s1062_s10, 0  ;;  %s404_s24 = int_to_ptr.vmem [resolvable:$true] %s403_s24 }
  0x69   : > { %545 = vmatprep.subr.mxu0 %v807_v0  ;;  %v271_v9 = vld [vmem:[#allocation7 + $0x38] sm:$0xff]  ;;  %v270_v10 = vld [vmem:[#allocation7 + $0x30] sm:$0xff]  ;;  %v269_v11 = vld [vmem:[#allocation7 + $0x28] sm:$0xff]  ;;  %s728_s23 = scalar_lea.vmem %s404_s24, 128  ;;  %s809_s28 = smov [#allocation8]  }
  0x6a   : > { %546 = vmatpush3.msra.mxu0 %v278_v2  ;;  %v268_v12 = vld [vmem:[#allocation7 + $0x20] sm:$0xff]  ;;  %v267_v13 = vld [vmem:[#allocation7 + $0x18] sm:$0xff]  ;;  %v266_v14 = vld [vmem:[#allocation7 + $0x10] sm:$0xff]  ;;  %vm362_vm1 = vcmp.lt.s32.totalorder %v361_v19, 32  ;;  %p729_p3 = scmp.ne.s32.totalorder %s404_s24, %s728_s23 }
  0x6b   : > { %547 = vmatprep.subr.mxu0 %v807_v0  ;;  %v265_v15 = vld [vmem:[#allocation7 + $0x8] sm:$0xff]  ;;  %v264_v16 = vld [vmem:[#allocation7] sm:$0xff]  ;;  %v358_v22 = vld [vmem:[%s230_s5] sm:$0xff]  ;;  %v519_v25 = vsel %vm362_vm1, 1.0, %v807_v0  ;;  %s732_s5 = sshll.u32 %s809_s28, 4  ;;  %s733_s5 = int_to_ptr.vmem [resolvable:$false] %s732_s5 }
  0x6c   : > { %548 = vmatpush3.msra.mxu0 %v277_v3  ;;  %v283_v17 = vld [vmem:[%s221_s25] sm:$0xff]  ;;  %s390_s25 = scalar_lea.sflag [#allocation4], %s976_s2  ;;  %p730_p10 = pnand %p729_p3, %p1068_p12 }
  0x6d   : > { %549 = vmatprep.subr.mxu0 %v807_v0  ;;  %v518_v20 = vld [vmem:[%s1049_s3] ss:$0 sm:$0xff]  ;;  %v520_v37 = vld [vmem:[%s1049_s3 + $0x1] ss:$0 sm:$0xff]  ;;  %v521_v39 = vld [vmem:[%s1049_s3 + $0x2] ss:$0 sm:$0xff]  ;;  %p735_p13 = scmp.lt.s32.totalorder %s404_s24, %s733_s5 }
  0x6e   : > { %550 = vmatpush3.msra.mxu0 %v276_v4  ;;  %p731_p2 = pneg %p730_p10  ;;  %s734_s19 = scalar_lea.vmem %s733_s5, 256 }
  0x6f   : > { %551 = vmatprep.subr.mxu0 %v807_v0  ;;  %p736_p0 = scmp.lt.s32.totalorder %s734_s19, %s728_s23 }
  0x70   : > { %552 = vmatpush3.msra.mxu0 %v275_v5 }
  0x71   : > { %553 = vmatprep.subr.mxu0 %v807_v0  ;;  %p737_p5 = por %p736_p0, %p735_p13 }
  0x72   : > { %554 = vmatpush3.msra.mxu0 %v274_v6 }
  0x73   : > { %555 = vmatprep.subr.mxu0 %v807_v0  ;;  %p738_p9 = pnand %p737_p5, %p731_p2 }
  0x74   : > { %556 = vmatpush3.msra.mxu0 %v273_v7 }
  0x75   : > { %557 = vmatprep.subr.mxu0 %v807_v0 }
  0x76   : > { %558 = vmatpush3.msra.mxu0 %v272_v8 }
  0x77   : > { %559 = vmatprep.subr.mxu0 %v807_v0 }
  0x78   : > { %560 = vmatpush3.msra.mxu0 %v271_v9 }
  0x79   : > { %561 = vmatprep.subr.mxu0 %v807_v0 }
  0x7a   : > { %562 = vmatpush3.msra.mxu0 %v270_v10 }
  0x7b   : > { %563 = vmatprep.subr.mxu0 %v807_v0 }
  0x7c   : > { %564 = vmatpush3.msra.mxu0 %v269_v11 }
  0x7d   : > { %565 = vmatprep.subr.mxu0 %v807_v0 }
  0x7e   : > { %566 = vmatpush3.msra.mxu0 %v268_v12 }
  0x7f   : > { %567 = vmatprep.subr.mxu0 %v807_v0 }
  0x80   : > { %568 = vmatpush3.msra.mxu0 %v267_v13 }
  0x81   : > { %569 = vmatprep.subr.mxu0 %v807_v0 }
  0x82   : > { %570 = vmatpush3.msra.mxu0 %v266_v14 }
  0x83   : > { %571 = vmatprep.subr.mxu0 %v807_v0 }
  0x84   : > { %572 = vmatpush3.msra.mxu0 %v265_v15 }
  0x85   : > { %573 = vmatprep.subr.mxu0 %v807_v0 }
  0x86   : > { %574 = vmatpush3.msra.mxu0 %v264_v16 }
  0x87   : > { %576 = vmatmul.mubr.f32.vlgmr.msra.gmra.mxu0 %v283_v17 }
 0x147   : > { %v354_v21 = vpop.f32.mrf.mxu0 }
 0x148   : > { %v355_v23 = vadd.f32 %v518_v20, %v354_v21 }
 0x149   : > { %v577_v24 = vpop.f32.mrf.mxu0 }
 0x14a   : > { %v359_v26 = vadd.f32 %v358_v22, %v355_v23 }
 0x14c   : > { %v365_v27 = vmul.f32 %v519_v25, %v359_v26 }
 0x14e   : > { %366 = vadd.xlane.f32.xlu0 %v365_v27 }
 0x1d7   : > { %v367_v28 = vpop.xlane.xlu0 %366 }
 0x1d8   : > { %v368_v29 = vmul.f32 0.03125, %v367_v28 }
 0x1da   : > { %v369_v30 = vsub.f32 %v359_v26, %v368_v29 }
 0x1dc   : > { %v370_v31 = vmul.f32 %v369_v30, %v369_v30 }
 0x1de   : > { %v371_v32 = vmul.f32 %v519_v25, %v370_v31 }
 0x1e0   : > { %372 = vadd.xlane.f32.xlu0 %v371_v32 }
 0x269   : > { %v373_v33 = vpop.xlane.xlu0 %372 }
 0x26a   : > { %v374_v34 = vmul.f32 0.03125, %v373_v33 }
 0x26c   : > { %v375_v35 = vadd.f32 1e-12, %v374_v34 }
 0x26e   : > { %644 = vrsqrt.f32 %v375_v35 }
 0x27b   : > { %v645_v36 = vpop.eup %644 }
 0x27c   : > { %v377_v38 = vmul.f32 %v645_v36, %v369_v30 }
 0x27e   : > { %v382_v40 = vmul.f32 %v520_v37, %v377_v38 }
 0x280   : > { %v387_v41 = vadd.f32 %v521_v39, %v382_v40 }
 0x282   : > { %388 = vst [vmem:[%s263_s13] sm:$0xff] %v387_v41 }
 0x283   : > { %741 = shalt.err (!%p738_p9)
}
 0x284   : > { %s742_s7 = scalar_lea.hbm %s401_s20, 128  ;;  %s746_s8 = scalar_lea.hbm %s1050_s4, 256 }
 0x285   : > { %p743_p1 = scmp.ne.s32.totalorder %s401_s20, %s742_s7  ;;  %p747_p7 = scmp.lt.s32.totalorder %s401_s20, %s1050_s4 }
 0x286   : > { %p748_p11 = scmp.lt.s32.totalorder %s746_s8, %s742_s7 }
 0x287   : > { %p744_p4 = pnand %p743_p1, %p1068_p12 }
 0x288   : > { %p749_p8 = por %p748_p11, %p747_p7 }
 0x289   : > { %p745_p6 = pneg %p744_p4 }
 0x28b   : > { %p750_p3 = pnand %p749_p8, %p745_p6 }
 0x28d   : > { %753 = shalt.err (!%p750_p3)
}
 0x28e   : > { %586 = dma.vmem_to_hbm [thread:$0]  (%p1068_p12), %s404_s24, 128, %s401_s20, %s390_s25  }
 0x28f PF: > { %s415_s12 = sand.u32 1, %s788_s15   ;;  %p1069_p10 = scmp.ne.s32.totalorder %s1057_s22, 0 }
 0x290   : > { %p1070_p2 = scmp.ge.s32.totalorder %s800_s18, 2  ;;  %s416_s29 = scalar_lea.sflag [#allocation4], %s415_s12 }
 0x292   : > { %p600_p13 = pnand %p1070_p2, %p1069_p10 }
 0x294   : > { %p601_p0 = pneg %p600_p13 }
 0x296   : > { %783 = dma.done.wait (%p601_p0), %s416_s29, 128  }
 0x297   : > { %785 = vsyncadd (%p601_p0), %s416_s29, 4294967168  ;;  %p20_p5 = scmp.ge.s32.totalorder %s889_s27, 4   ;;  %s1071_s15 = smov %s792_s16 }
 0x298   : > { %s1072_s16 = smov %s796_s17  ;;  %s1073_s17 = smov %s906_s9 }
 0x299   : > { %s1074_s18 = smov %s889_s27  ;;  %22 = sbr.rel (!%p20_p5) target bundleno = 9 (0x9), region = 98 }
 0x29e   :  { %421 = vsyncpa [#allocation3], 1 }
 0x29f   :  { %423 = vsyncpa [#allocation3 + $0x1], 1 }
 0x2a0   :  { %424 = vsyncpa [#allocation6], 1 }
 0x2a1   :  { %426 = vsyncpa [#allocation6 + $0x1], 1 }
 0x2a2   :  { %427 = vsyncpa [#allocation4], 1 }
 0x2a3   :  { %429 = vsyncpa [#allocation4 + $0x1], 1 }

// kernel: tpu_custom_call.1
= control target key start
LH: loop header
LB: loop body
LE: loop exit
PB: predicated region body
PF: predicated region fallthrough
CT: control target
= control target key end

     0   :  { %s1046_s0 = inlined_call_operand.hbm [shape: f32[16,128], index: 0, kind: input, shape index: {}]   ;;  %s1047_s1 = inlined_call_operand.hbm [shape: f32[16,128], index: 1, kind: input, shape index: {}]   ;;  %s1048_s2 = inlined_call_operand.hbm [shape: f32[128,128], index: 2, kind: input, shape index: {}]   ;;  %s1049_s3 = inlined_call_operand.vmem [shape: f32[3,128], index: 3, kind: input, shape index: {}]   ;;  %s1050_s4 = inlined_call_operand.hbm [shape: f32[16,128], index: 4, kind: output, shape index: {}]  }
   0x1   :  { %1055 = sst [smem:[#allocation13_spill]] %s1048_s2 }
   0x2   :  { %9 = vsyncpa [#allocation3], 0 }
   0x3   :  { %11 = vsyncpa [#allocation3 + $0x1], 0 }
   0x4   :  { %12 = vsyncpa [#allocation6], 0 }
   0x5   :  { %14 = vsyncpa [#allocation6 + $0x1], 0 }
   0x6   :  { %15 = vsyncpa [#allocation4], 0 }
   0x7   :  { %17 = vsyncpa [#allocation4 + $0x1], 0  ;;  %s835_s15 = smov 0   ;;  %s837_s16 = smov 0  }
   0x8   :  { %s839_s17 = smov 0   ;;  %s841_s18 = smov 0  }
   0x9 LB: > { %s856_s19 = sadd.s32 4294967295, %s800_s18   ;;  %s505_s20 = sadd.s32 4294967294, %s800_s18   ;;  %s800_s18 = sphi %s841_s18, %s1074_s18   ;;  %s796_s17 = sphi %s839_s17, %s1073_s17   ;;  %s792_s16 = sphi %s837_s16, %s1072_s16   ;;  %s788_s15 = sphi %s835_s15, %s1071_s15  }
   0xa   : > { %p43_p0 = scmp.ne.s32.totalorder %s792_s16, %s788_s15  ;;  %p1051_p1 = scmp.eq.s32.totalorder %s856_s19, 0 }
   0xb   : > { %p141_p3 = scmp.eq.s32.totalorder %s505_s20, 1  ;;  %p506_p5 = scmp.ge.s32.totalorder %s800_s18, 1 }
   0xc   : > { %p865_p4 = por %p1051_p1, %p43_p0  ;;  %p148_p7 = scmp.lt.s32.totalorder %s800_s18, 3 }
   0xd   : > { %p870_p6 = por %p141_p3, %p43_p0  ;;  %s802_s24 = smov [#allocation7]  }
   0xe   : > { %s1056_s21 = scalar_select %p865_p4, 1, 0 }
   0xf   : > { %s1057_s22 = scalar_select %p870_p6, 1, 0 }
  0x10   : > { %p875_p8 = pnand %p506_p5, %p148_p7  ;;  %s160_s25 = sshll.u32 %s802_s24, 4  ;;  %s161_s25 = int_to_ptr.vmem [resolvable:$true] %s160_s25 }
  0x11   : > { %s889_s27 = sadd.s32 1, %s800_s18   ;;  %s30_s28 = sadd.s32 1, %s796_s17 }
  0x12   : > { %s1058_s23 = scalar_select %p875_p8, 1, 0 }
  0x13   : > { %p588_p9 = pneg %p875_p8  ;;  %s27_s29 = ssub.s32 %s800_s18, %s889_s27 }
  0x14   : > { %s657_s30 = scalar_lea.vmem %s161_s25, 2048  ;;  %p665_p5 = scmp.lt.s32.totalorder %s161_s25, %s161_s25 }
  0x15   : > { %p884_p11 = pnand %p588_p9, %p1051_p1  ;;  %p658_p13 = scmp.ne.s32.totalorder %s161_s25, %s657_s30 }
  0x16   : > { %p666_p7 = scmp.lt.s32.totalorder %s657_s30, %s657_s30 }
  0x17   : > { %p648_p12 = pneg %p884_p11 }
  0x18   : > { %p667_p10 = por %p666_p7, %p665_p5 }
  0x19   : > { %p660_p0 = pnand %p658_p13, %p648_p12 }
  0x1b   : > { %p661_p3 = pneg %p660_p0 }
  0x1d   : > { %p668_p2 = pnand %p667_p10, %p661_p3 }
  0x1f   : > { %671 = shalt.err (!%p668_p2)
}
  0x20   : > { %s803_s5 = smov 128   ;;  %s804_s6 = smov 8  }
  0x21   : > { %s1060_s2 = sld [smem:[#allocation13_spill]]  ;;  %p28_p9 = scmp.eq.s32.totalorder %s27_s29, 0 }
  0x22   : > { %p37_p12 = scmp.ne.s32.totalorder %s796_s17, %s792_s16  ;;  %p38_p10 = scmp.eq.s32.totalorder %s800_s18, 0 }
  0x23   : > { %p604_p2 = scmp.lt.s32.totalorder %s800_s18, 2  ;;  %p1061_p0 = scmp.eq.s32.totalorder %s856_s19, 1 }
  0x24   : > { %s906_s9 = scalar_select %p28_p9, %s796_s17, %s30_s28  }
  0x25   : > { %p39_p13 = por %p38_p10, %p37_p12  ;;  %p910_p3 = por %p1061_p0, %p37_p12 }
  0x26   : > { %s177_s11 = sand.u32 1, %s796_s17   ;;  %s510_s12 = sshll.u32 %s800_s18, 7 }
  0x27   : > { %591 = dma.hbm_to_vmem [thread:$0]  (!%p884_p11), %s1060_s2, 2048, %s161_s25, [#allocation6], %s803_s5, %s803_s5, %s804_s6  }
  0x28   : > { %s1062_s10 = scalar_select %p910_p3, 1, 0 }
  0x29   : > { %s916_s13 = sshll.u32 %s177_s11, 3  ;;  %s921_s24 = scalar_lea.hbm %s1046_s0, %s510_s12 }
  0x2a   : > { %s181_s25 = scalar_lea.vmem [#allocation2], %s916_s13  ;;  %p924_p11 = pnand %p604_p2, %p39_p13 }
  0x2b   : > { %s188_s26 = sshll.u32 %s181_s25, 4  ;;  %s931_s5 = scalar_lea.hbm %s1047_s1, %s510_s12  ;;  %s189_s26 = int_to_ptr.vmem [resolvable:$true] %s188_s26 }
  0x2c   : > { %s178_s6 = scalar_lea.sflag [#allocation3], %s177_s11  ;;  %s672_s7 = scalar_lea.hbm %s921_s24, 128 }
  0x2d   : > { %p673_p5 = scmp.ne.s32.totalorder %s921_s24, %s672_s7  ;;  %p674_p7 = pneg %p924_p11 }
  0x2e   : > { %s677_s20 = scalar_lea.hbm %s1046_s0, 256  ;;  %p678_p10 = scmp.lt.s32.totalorder %s921_s24, %s1046_s0 }
  0x2f   : > { %p675_p9 = pnand %p674_p7, %p673_p5  ;;  %p679_p2 = scmp.lt.s32.totalorder %s677_s20, %s672_s7 }
  0x31   : > { %p676_p12 = pneg %p675_p9  ;;  %p680_p13 = por %p679_p2, %p678_p10 }
  0x33   : > { %p681_p0 = pnand %p680_p13, %p676_p12 }
  0x35   : > { %684 = shalt.err (!%p681_p0)
}
  0x36   : > { %s685_s11 = scalar_lea.vmem %s189_s26, 128  ;;  %s805_s12 = smov [#allocation2]  }
  0x37   : > { %p686_p1 = scmp.ne.s32.totalorder %s189_s26, %s685_s11  ;;  %s690_s29 = sshll.u32 %s805_s12, 4  ;;  %s691_s29 = int_to_ptr.vmem [resolvable:$false] %s690_s29 }
  0x38   : > { %s692_s30 = scalar_lea.vmem %s691_s29, 256  ;;  %p693_p9 = scmp.lt.s32.totalorder %s189_s26, %s691_s29 }
  0x39   : > { %p688_p6 = pnand %p686_p1, %p674_p7  ;;  %p694_p3 = scmp.lt.s32.totalorder %s692_s30, %s685_s11 }
  0x3b   : > { %p689_p5 = pneg %p688_p6  ;;  %p695_p4 = por %p694_p3, %p693_p9 }
  0x3d   : > { %p696_p8 = pnand %p695_p4, %p689_p5 }
  0x3f   : > { %699 = shalt.err (!%p696_p8)
}
  0x40   : > { %595 = dma.hbm_to_vmem [thread:$0]  (!%p924_p11), %s921_s24, 128, %s189_s26, %s178_s6  }
  0x41   : > { %s195_s2 = sand.u32 1, %s800_s18   ;;  %s199_s7 = scalar_lea.vmem [#allocation5], %s916_s13 }
  0x42   : > { %s206_s8 = sshll.u32 %s199_s7, 4  ;;  %s196_s14 = scalar_lea.sflag [#allocation6], %s195_s2  ;;  %s207_s8 = int_to_ptr.vmem [resolvable:$true] %s206_s8 }
  0x43   : > { %s700_s20 = scalar_lea.hbm %s931_s5, 128  ;;  %s705_s12 = scalar_lea.hbm %s1047_s1, 256 }
  0x44   : > { %p701_p1 = scmp.ne.s32.totalorder %s931_s5, %s700_s20  ;;  %p706_p8 = scmp.lt.s32.totalorder %s931_s5, %s1047_s1 }
  0x45   : > { %p707_p3 = scmp.lt.s32.totalorder %s705_s12, %s700_s20 }
  0x46   : > { %p703_p4 = pnand %p701_p1, %p674_p7 }
  0x47   : > { %p708_p12 = por %p707_p3, %p706_p8 }
  0x48   : > { %p704_p6 = pneg %p703_p4 }
  0x4a   : > { %p709_p10 = pnand %p708_p12, %p704_p6 }
  0x4c   : > { %712 = shalt.err (!%p709_p10)
}
  0x4d   : > { %s713_s13 = scalar_lea.vmem %s207_s8, 128  ;;  %s806_s24 = smov [#allocation5]  }
  0x4e   : > { %p714_p2 = scmp.ne.s32.totalorder %s207_s8, %s713_s13  ;;  %s718_s26 = sshll.u32 %s806_s24, 4  ;;  %s719_s26 = int_to_ptr.vmem [resolvable:$false] %s718_s26 }
  0x4f   : > { %s720_s6 = scalar_lea.vmem %s719_s26, 256  ;;  %p721_p5 = scmp.lt.s32.totalorder %s207_s8, %s719_s26 }
  0x50   : > { %p716_p13 = pnand %p714_p2, %p674_p7  ;;  %p722_p9 = scmp.lt.s32.totalorder %s720_s6, %s713_s13 }
  0x52   : > { %p717_p0 = pneg %p716_p13  ;;  %p723_p1 = por %p722_p9, %p721_p5 }
  0x54   : > { %p724_p4 = pnand %p723_p1, %p717_p0 }
  0x56   : > { %727 = shalt.err (!%p724_p4)
}
  0x57   : > { %598 = dma.hbm_to_vmem [thread:$0]  (!%p924_p11), %s931_s5, 128, %s207_s8, %s196_s14  }
  0x58   : > { %p1064_p6 = scmp.ne.s32.totalorder %s1058_s23, 0 }
  0x59   : > { %s976_s2 = sand.u32 (!%p1064_p6), 1, %s792_s16   ;;  %p1065_p7 = scmp.ne.s32.totalorder (!%p1064_p6), %s1056_s21, 0 }
  0x5a   : > { %215 = sbr.rel (%p1064_p6) target bundleno = 655 (0x28f), region = 36  ;;  %s979_s7 = sshll.u32 (!%p1064_p6), %s976_s2, 3 }
  0x5b   : > { %s218_s20 = scalar_lea.sflag (!%p1064_p6), [#allocation3], %s976_s2  ;;  %s221_s25 = scalar_lea.vmem (!%p1064_p6), [#allocation2], %s979_s7 }
  0x5f   : > { %771 = dma.done.wait (%p1065_p7), %s218_s20, 128  }
  0x60   : > { %773 = vsyncadd (%p1065_p7), %s218_s20, 4294967168  ;;  %s226_s23 = sand.u32 1, %s856_s19   ;;  %s230_s5 = scalar_lea.vmem [#allocation5], %s979_s7 }
  0x61   : > { %s227_s28 = scalar_lea.sflag [#allocation6], %s226_s23 }
  0x62   : > { %775 = dma.done.wait (%p1065_p7), %s227_s28, 128  }
  0x63   : > { %777 = vsyncadd (%p1065_p7), %s227_s28, 4294967168  ;;  %p1066_p11 = scmp.eq.s32.totalorder %s856_s19, 0 }
  0x65   : > { %779 = dma.done.wait (%p1066_p11), [#allocation6], 2048   ;;  %p1067_p8 = pmov %p1066_p11 }
  0x66   : > { %v807_v0 = vmov 0.0   ;;  %vm808_vm0 = vmmov 0   ;;  %v279_v1 = vld [vmem:[#allocation7 + $0x78] sm:$0xff]  ;;  %v278_v2 = vld [vmem:[#allocation7 + $0x70] sm:$0xff]  ;;  %v277_v3 = vld [vmem:[#allocation7 + $0x68] sm:$0xff]  ;;  %v360_v18 = vlaneseq  ;;  %s523_s30 = sshll.u32 %s856_s19, 7 }
  0x67   : > { %781 = vsyncadd (%p1067_p8), [#allocation6], 4294965248  ;;  %543 = vmatprep.subr.mxu0 %v807_v0  ;;  %575 = vmatprep.mubr.msk.f32.mxu0 %vm808_vm0, %v807_v0  ;;  %v276_v4 = vld [vmem:[#allocation7 + $0x60] sm:$0xff]  ;;  %v275_v5 = vld [vmem:[#allocation7 + $0x58] sm:$0xff]  ;;  %s263_s13 = scalar_lea.vmem [#allocation8], %s979_s7  ;;  %s401_s20 = scalar_lea.hbm %s1050_s4, %s523_s30 }
  0x68   : > { %544 = vmatpush3.msra.mxu0 %v279_v1  ;;  %v274_v6 = vld [vmem:[#allocation7 + $0x50] sm:$0xff]  ;;  %v273_v7 = vld [vmem:[#allocation7 + $0x48] sm:$0xff]  ;;  %v272_v8 = vld [vmem:[#allocation7 + $0x40] sm:$0xff]  ;;  %v361_v19 = vand.u32 127, %v360_v18  ;;  %s403_s24 = sshll.u32 %s263_s13, 4  ;;  %p1068_p12 = scmp.ne.s32.totalorder %s1062_s10, 0  ;;  %s404_s24 = int_to_ptr.vmem [resolvable:$true] %s403_s24 }
  0x69   : > { %545 = vmatprep.subr.mxu0 %v807_v0  ;;  %v271_v9 = vld [vmem:[#allocation7 + $0x38] sm:$0xff]  ;;  %v270_v10 = vld [vmem:[#allocation7 + $0x30] sm:$0xff]  ;;  %v269_v11 = vld [vmem:[#allocation7 + $0x28] sm:$0xff]  ;;  %s728_s23 = scalar_lea.vmem %s404_s24, 128  ;;  %s809_s28 = smov [#allocation8]  }
  0x6a   : > { %546 = vmatpush3.msra.mxu0 %v278_v2  ;;  %v268_v12 = vld [vmem:[#allocation7 + $0x20] sm:$0xff]  ;;  %v267_v13 = vld [vmem:[#allocation7 + $0x18] sm:$0xff]  ;;  %v266_v14 = vld [vmem:[#allocation7 + $0x10] sm:$0xff]  ;;  %vm362_vm1 = vcmp.lt.s32.totalorder %v361_v19, 32  ;;  %p729_p3 = scmp.ne.s32.totalorder %s404_s24, %s728_s23 }
  0x6b   : > { %547 = vmatprep.subr.mxu0 %v807_v0  ;;  %v265_v15 = vld [vmem:[#allocation7 + $0x8] sm:$0xff]  ;;  %v264_v16 = vld [vmem:[#allocation7] sm:$0xff]  ;;  %v358_v22 = vld [vmem:[%s230_s5] sm:$0xff]  ;;  %v519_v25 = vsel %vm362_vm1, 1.0, %v807_v0  ;;  %s732_s5 = sshll.u32 %s809_s28, 4  ;;  %s733_s5 = int_to_ptr.vmem [resolvable:$false] %s732_s5 }
  0x6c   : > { %548 = vmatpush3.msra.mxu0 %v277_v3  ;;  %v283_v17 = vld [vmem:[%s221_s25] sm:$0xff]  ;;  %s390_s25 = scalar_lea.sflag [#allocation4], %s976_s2  ;;  %p730_p10 = pnand %p729_p3, %p1068_p12 }
  0x6d   : > { %549 = vmatprep.subr.mxu0 %v807_v0  ;;  %v518_v20 = vld [vmem:[%s1049_s3] ss:$0 sm:$0xff]  ;;  %v520_v37 = vld [vmem:[%s1049_s3 + $0x1] ss:$0 sm:$0xff]  ;;  %v521_v39 = vld [vmem:[%s1049_s3 + $0x2] ss:$0 sm:$0xff]  ;;  %p735_p13 = scmp.lt.s32.totalorder %s404_s24, %s733_s5 }
  0x6e   : > { %550 = vmatpush3.msra.mxu0 %v276_v4  ;;  %p731_p2 = pneg %p730_p10  ;;  %s734_s19 = scalar_lea.vmem %s733_s5, 256 }
  0x6f   : > { %551 = vmatprep.subr.mxu0 %v807_v0  ;;  %p736_p0 = scmp.lt.s32.totalorder %s734_s19, %s728_s23 }
  0x70   : > { %552 = vmatpush3.msra.mxu0 %v275_v5 }
  0x71   : > { %553 = vmatprep.subr.mxu0 %v807_v0  ;;  %p737_p5 = por %p736_p0, %p735_p13 }
  0x72   : > { %554 = vmatpush3.msra.mxu0 %v274_v6 }
  0x73   : > { %555 = vmatprep.subr.mxu0 %v807_v0  ;;  %p738_p9 = pnand %p737_p5, %p731_p2 }
  0x74   : > { %556 = vmatpush3.msra.mxu0 %v273_v7 }
  0x75   : > { %557 = vmatprep.subr.mxu0 %v807_v0 }
  0x76   : > { %558 = vmatpush3.msra.mxu0 %v272_v8 }
  0x77   : > { %559 = vmatprep.subr.mxu0 %v807_v0 }
  0x78   : > { %560 = vmatpush3.msra.mxu0 %v271_v9 }
  0x79   : > { %561 = vmatprep.subr.mxu0 %v807_v0 }
  0x7a   : > { %562 = vmatpush3.msra.mxu0 %v270_v10 }
  0x7b   : > { %563 = vmatprep.subr.mxu0 %v807_v0 }
  0x7c   : > { %564 = vmatpush3.msra.mxu0 %v269_v11 }
  0x7d   : > { %565 = vmatprep.subr.mxu0 %v807_v0 }
  0x7e   : > { %566 = vmatpush3.msra.mxu0 %v268_v12 }
  0x7f   : > { %567 = vmatprep.subr.mxu0 %v807_v0 }
  0x80   : > { %568 = vmatpush3.msra.mxu0 %v267_v13 }
  0x81   : > { %569 = vmatprep.subr.mxu0 %v807_v0 }
  0x82   : > { %570 = vmatpush3.msra.mxu0 %v266_v14 }
  0x83   : > { %571 = vmatprep.subr.mxu0 %v807_v0 }
  0x84   : > { %572 = vmatpush3.msra.mxu0 %v265_v15 }
  0x85   : > { %573 = vmatprep.subr.mxu0 %v807_v0 }
  0x86   : > { %574 = vmatpush3.msra.mxu0 %v264_v16 }
  0x87   : > { %576 = vmatmul.mubr.f32.vlgmr.msra.gmra.mxu0 %v283_v17 }
 0x147   : > { %v354_v21 = vpop.f32.mrf.mxu0 }
 0x148   : > { %v355_v23 = vadd.f32 %v518_v20, %v354_v21 }
 0x149   : > { %v577_v24 = vpop.f32.mrf.mxu0 }
 0x14a   : > { %v359_v26 = vadd.f32 %v358_v22, %v355_v23 }
 0x14c   : > { %v365_v27 = vmul.f32 %v519_v25, %v359_v26 }
 0x14e   : > { %366 = vadd.xlane.f32.xlu0 %v365_v27 }
 0x1d7   : > { %v367_v28 = vpop.xlane.xlu0 %366 }
 0x1d8   : > { %v368_v29 = vmul.f32 0.03125, %v367_v28 }
 0x1da   : > { %v369_v30 = vsub.f32 %v359_v26, %v368_v29 }
 0x1dc   : > { %v370_v31 = vmul.f32 %v369_v30, %v369_v30 }
 0x1de   : > { %v371_v32 = vmul.f32 %v519_v25, %v370_v31 }
 0x1e0   : > { %372 = vadd.xlane.f32.xlu0 %v371_v32 }
 0x269   : > { %v373_v33 = vpop.xlane.xlu0 %372 }
 0x26a   : > { %v374_v34 = vmul.f32 0.03125, %v373_v33 }
 0x26c   : > { %v375_v35 = vadd.f32 1e-12, %v374_v34 }
 0x26e   : > { %644 = vrsqrt.f32 %v375_v35 }
 0x27b   : > { %v645_v36 = vpop.eup %644 }
 0x27c   : > { %v377_v38 = vmul.f32 %v645_v36, %v369_v30 }
 0x27e   : > { %v382_v40 = vmul.f32 %v520_v37, %v377_v38 }
 0x280   : > { %v387_v41 = vadd.f32 %v521_v39, %v382_v40 }
 0x282   : > { %388 = vst [vmem:[%s263_s13] sm:$0xff] %v387_v41 }
 0x283   : > { %741 = shalt.err (!%p738_p9)
}
 0x284   : > { %s742_s7 = scalar_lea.hbm %s401_s20, 128  ;;  %s746_s8 = scalar_lea.hbm %s1050_s4, 256 }
 0x285   : > { %p743_p1 = scmp.ne.s32.totalorder %s401_s20, %s742_s7  ;;  %p747_p7 = scmp.lt.s32.totalorder %s401_s20, %s1050_s4 }
 0x286   : > { %p748_p11 = scmp.lt.s32.totalorder %s746_s8, %s742_s7 }
 0x287   : > { %p744_p4 = pnand %p743_p1, %p1068_p12 }
 0x288   : > { %p749_p8 = por %p748_p11, %p747_p7 }
 0x289   : > { %p745_p6 = pneg %p744_p4 }
 0x28b   : > { %p750_p3 = pnand %p749_p8, %p745_p6 }
 0x28d   : > { %753 = shalt.err (!%p750_p3)
}
 0x28e   : > { %586 = dma.vmem_to_hbm [thread:$0]  (%p1068_p12), %s404_s24, 128, %s401_s20, %s390_s25  }
 0x28f PF: > { %s415_s12 = sand.u32 1, %s788_s15   ;;  %p1069_p10 = scmp.ne.s32.totalorder %s1057_s22, 0 }
 0x290   : > { %p1070_p2 = scmp.ge.s32.totalorder %s800_s18, 2  ;;  %s416_s29 = scalar_lea.sflag [#allocation4], %s415_s12 }
 0x292   : > { %p600_p13 = pnand %p1070_p2, %p1069_p10 }
 0x294   : > { %p601_p0 = pneg %p600_p13 }
 0x296   : > { %783 = dma.done.wait (%p601_p0), %s416_s29, 128  }
 0x297   : > { %785 = vsyncadd (%p601_p0), %s416_s29, 4294967168  ;;  %p20_p5 = scmp.ge.s32.totalorder %s889_s27, 4   ;;  %s1071_s15 = smov %s792_s16 }
 0x298   : > { %s1072_s16 = smov %s796_s17  ;;  %s1073_s17 = smov %s906_s9 }
 0x299   : > { %s1074_s18 = smov %s889_s27  ;;  %22 = sbr.rel (!%p20_p5) target bundleno = 9 (0x9), region = 98 }
 0x29e   :  { %421 = vsyncpa [#allocation3], 1 }
 0x29f   :  { %423 = vsyncpa [#allocation3 + $0x1], 1 }
 0x2a0   :  { %424 = vsyncpa [#allocation6], 1 }
 0x2a1   :  { %426 = vsyncpa [#allocation6 + $0x1], 1 }
 0x2a2   :  { %427 = vsyncpa [#allocation4], 1 }
 0x2a3   :  { %429 = vsyncpa [#allocation4 + $0x1], 1 }

</bundles_post_ra>
